<compile_context>
chip_gen: v6e
topology: v6e:2x2x1
jax: 0.10.0
libtpu: 0.0.40
codegen_flags: <defaults>
</compile_context>

<pallas_src>
import jax
import jax.numpy as jnp
from jax.experimental import pallas as pl
from jax.experimental.pallas import tpu as pltpu


def regression_head_kernel(x_ref, w1_ref, b1_ref, w2_ref, b2_ref, o_ref):
    # x: [TB, H]  w1: [H, H]  b1: [1, H]  w2: [1, H]  b2 (SMEM): [1]  o: [TB, 1]
    x = x_ref[...]
    # dense (MXU, f32 accumulate) + bias + ReLU.  Dropout == identity in eval mode.
    h = jnp.dot(x, w1_ref[...], preferred_element_type=jnp.float32)
    h = jnp.maximum(h + b1_ref[...].astype(jnp.float32), 0.0)
    # out_proj with N=1: VPU multiply + lane reduce instead of a degenerate MXU matmul.
    z = jnp.sum(h * w2_ref[...].astype(jnp.float32), axis=-1, keepdims=True)
    o_ref[...] = (z + b2_ref[0]).astype(o_ref.dtype)


def regression_head(features, w1, b1, w2, b2, *, block_b=512, compute_dtype=None):
    """features: [B, H].  Returns [B] (PyTorch's .squeeze() of the size-1 output dim).

    w1: [H, H] pre-transposed dense weight, b1: [H] or [1, H],
    w2: out_proj weight in any of [1, H] / [H, 1] / [H], b2: scalar-shaped.
    compute_dtype: e.g. jnp.bfloat16 to halve w1/x HBM traffic (f32 accumulation kept).
    """
    B, H = features.shape
    b1_row = jnp.asarray(b1, jnp.float32).reshape(1, H)
    w2_row = jnp.asarray(w2, jnp.float32).reshape(1, H)   # lane-dense row, not a [H,1] column
    b2_s = jnp.asarray(b2, jnp.float32).reshape(1)

    x = features
    if compute_dtype is not None:
        x = x.astype(compute_dtype)
        w1 = w1.astype(compute_dtype)

    # Batch tiling: double-buffered (TB, H) activation tiles, weights resident.
    TB = min(block_b, B)
    TB = max(8, ((TB + 7) // 8) * 8)          # sublane multiple of 8
    nb = pl.cdiv(B, TB)
    B_pad = nb * TB
    if B_pad != B:
        x = jnp.pad(x, ((0, B_pad - B), (0, 0)))

    # Scoped-VMEM budget: resident weights + double-buffered tiles + f32 intermediate.
    x_item = jnp.dtype(x.dtype).itemsize
    w1_item = jnp.dtype(w1.dtype).itemsize
    vmem_bytes = (
        H * H * w1_item          # resident w1
        + 2 * H * 4              # b1 / w2 rows
        + 2 * TB * H * x_item    # double-buffered x tiles
        + 2 * TB * 4             # double-buffered output tiles
        + TB * H * 4             # f32 intermediate h
    )
    vmem_limit = min(max(vmem_bytes * 3 // 2, 16 * 1024 * 1024), 64 * 1024 * 1024)

    out = pl.pallas_call(
        regression_head_kernel,
        out_shape=jax.ShapeDtypeStruct((B_pad, 1), jnp.float32),
        grid_spec=pltpu.PrefetchScalarGridSpec(
            num_scalar_prefetch=0,
            grid=(nb,),
            in_specs=[
                pl.BlockSpec((TB, H), lambda i: (i, 0)),             # x: pipelined over batch
                pl.BlockSpec((H, H), lambda i: (0, 0)),              # w1: resident
                pl.BlockSpec((1, H), lambda i: (0, 0)),              # b1: resident
                pl.BlockSpec((1, H), lambda i: (0, 0)),              # w2 row: resident
                pl.BlockSpec(memory_space=pltpu.MemorySpace.SMEM),   # b2: SMEM scalar
            ],
            out_specs=pl.BlockSpec((TB, 1), lambda i: (i, 0)),
        ),
        compiler_params=pltpu.CompilerParams(
            # Rows are independent: "parallel" shards the batch grid axis across the
            # two TensorCores on v7x; harmless on v5e/v6e (single TC).
            dimension_semantics=("parallel",),
            vmem_limit_bytes=int(vmem_limit),
        ),
    )(x, w1, b1_row, w2_row, b2_s)

    # torch .squeeze(): drop the size-1 last dim -> [B]  (also drop batch padding)
    return jnp.squeeze(out[:B], axis=-1)


if __name__ == "__main__":
    # NOTE: at shapes this small (H=32) a plain XLA fusion would beat any custom kernel;
    # the shapes are kept tiny only to exercise/verify the kernel cheaply.
    B, H = 8, 32

    key = jax.random.PRNGKey(0)
    k_x, k_w1, k_b1, k_w2, k_b2 = jax.random.split(key, 5)

    features = jax.random.normal(k_x, (B, H), dtype=jnp.float32)
    w1 = jax.random.normal(k_w1, (H, H), dtype=jnp.float32) * 0.1   # dense weight (pre-transposed)
    b1 = jax.random.normal(k_b1, (H,), dtype=jnp.float32) * 0.1     # dense bias
    w2 = jax.random.normal(k_w2, (1, H), dtype=jnp.float32) * 0.1   # out_proj weight (torch layout)
    b2 = jax.random.normal(k_b2, (1,), dtype=jnp.float32) * 0.1     # out_proj bias

    # Reference (same math as the PyTorch module in eval mode).
    ref = jnp.squeeze(jnp.maximum(features @ w1 + b1[None, :], 0.0) @ w2.T + b2, axis=-1)

    # f32 path: exact check.
    out = jax.block_until_ready(regression_head(features, w1, b1, w2, b2))
    assert out.shape == (B,)
    assert jnp.allclose(out, ref, atol=1e-5, rtol=1e-5)

    # bf16 weights/activations path (recommended on v6e/v7x): looser tolerance.
    out_bf16 = jax.block_until_ready(
        regression_head(features, w1, b1, w2, b2, compute_dtype=jnp.bfloat16)
    )
    assert out_bf16.shape == (B,)
    assert jnp.allclose(out_bf16, ref, atol=5e-2, rtol=5e-2)

    print("KERNEL_OK")
</pallas_src>

<mosaic_0001>
module attributes {stable_mosaic.version = 11 : i64} {
  func.func @regression_head_kernel(%arg0: i32, %arg1: memref<8x32xf32, #tpu.memory_space<vmem>>, %arg2: memref<32x32xf32, #tpu.memory_space<vmem>>, %arg3: memref<1x32xf32, #tpu.memory_space<vmem>>, %arg4: memref<1x32xf32, #tpu.memory_space<vmem>>, %arg5: memref<1xf32, #tpu.memory_space<smem>>, %arg6: memref<8x1xf32, #tpu.memory_space<vmem>>) attributes {dimension_semantics = [#tpu.dimension_semantics<parallel>], iteration_bounds = array<i64: 1>, scalar_prefetch = 0 : i64, scratch_operands = 0 : i64, tpu.core_type = #tpu.core_type<tc>, window_params = [{transform_indices = @transform_0, window_bounds = array<i64: 8, 32>}, {pipeline_mode = #tpu.pipeline_mode<synchronous>, transform_indices = @transform_1, window_bounds = array<i64: 32, 32>}, {pipeline_mode = #tpu.pipeline_mode<synchronous>, transform_indices = @transform_2, window_bounds = array<i64: 1, 32>}, {pipeline_mode = #tpu.pipeline_mode<synchronous>, transform_indices = @transform_3, window_bounds = array<i64: 1, 32>}, {transform_indices = @transform_4, window_bounds = array<i64: 1>}, {transform_indices = @transform_5, window_bounds = array<i64: 8, 1>}]} {
    %c0 = arith.constant 0 : index
    %c0_0 = arith.constant 0 : index
    %0 = vector.load %arg1[%c0, %c0_0] : memref<8x32xf32, #tpu.memory_space<vmem>>, vector<8x32xf32>
    %c0_1 = arith.constant 0 : index
    %c0_2 = arith.constant 0 : index
    %1 = vector.load %arg2[%c0_1, %c0_2] : memref<32x32xf32, #tpu.memory_space<vmem>>, vector<32x32xf32>
    %cst = arith.constant dense<0.000000e+00> : vector<8x32xf32>
    %2 = tpu.matmul %0, %1, %cst {dimension_numbers = #tpu.dot_dimension_numbers<[1], [0], [0], [1], [0, 0, 1, 1], [], []>} : vector<8x32xf32>, vector<32x32xf32>, vector<8x32xf32> -> vector<8x32xf32>
    %c0_3 = arith.constant 0 : index
    %c0_4 = arith.constant 0 : index
    %3 = vector.load %arg3[%c0_3, %c0_4] : memref<1x32xf32, #tpu.memory_space<vmem>>, vector<1x32xf32>
    %4 = vector.broadcast %3 : vector<1x32xf32> to vector<8x32xf32>
    %5 = arith.addf %2, %4 : vector<8x32xf32>
    %cst_5 = arith.constant 0.000000e+00 : f32
    %6 = vector.broadcast %cst_5 : f32 to vector<8x32xf32>
    %7 = arith.maximumf %5, %6 : vector<8x32xf32>
    %c0_6 = arith.constant 0 : index
    %c0_7 = arith.constant 0 : index
    %8 = vector.load %arg4[%c0_6, %c0_7] : memref<1x32xf32, #tpu.memory_space<vmem>>, vector<1x32xf32>
    %9 = vector.broadcast %8 : vector<1x32xf32> to vector<8x32xf32>
    %10 = arith.mulf %7, %9 : vector<8x32xf32>
    %cst_8 = arith.constant dense<0.000000e+00> : vector<8xf32>
    %11 = vector.multi_reduction <add>, %10, %cst_8 [1] : vector<8x32xf32> to vector<8xf32>
    %12 = vector.shape_cast %11 : vector<8xf32> to vector<8x1xf32>
    %c0_9 = arith.constant 0 : index
    %13 = memref.load %arg5[%c0_9] : memref<1xf32, #tpu.memory_space<smem>>
    %14 = vector.broadcast %13 : f32 to vector<8x1xf32>
    %15 = arith.addf %12, %14 : vector<8x1xf32>
    %c0_10 = arith.constant 0 : index
    %c0_11 = arith.constant 0 : index
    %16 = vector.load %arg6[%c0_10, %c0_11] : memref<8x1xf32, #tpu.memory_space<vmem>>, vector<8x1xf32>
    tpu.vector_store %arg6[%c0_10, %c0_11], %15 {strides = array<i32>} : memref<8x1xf32, #tpu.memory_space<vmem>>, vector<8x1xf32>,
    return
  }
  func.func @transform_0(%arg0: i32) -> (i32, i32) {
    %c0_i32 = arith.constant 0 : i32
    %c0_i32_0 = arith.constant 0 : i32
    return %arg0, %c0_i32 : i32, i32
  }
  func.func @transform_1(%arg0: i32) -> (i32, i32) {
    %c0_i32 = arith.constant 0 : i32
    %c0_i32_0 = arith.constant 0 : i32
    %c0_i32_1 = arith.constant 0 : i32
    return %c0_i32, %c0_i32_0 : i32, i32
  }
  func.func @transform_2(%arg0: i32) -> (i32, i32) {
    %c0_i32 = arith.constant 0 : i32
    %c0_i32_0 = arith.constant 0 : i32
    %c0_i32_1 = arith.constant 0 : i32
    return %c0_i32, %c0_i32_0 : i32, i32
  }
  func.func @transform_3(%arg0: i32) -> (i32, i32) {
    %c0_i32 = arith.constant 0 : i32
    %c0_i32_0 = arith.constant 0 : i32
    %c0_i32_1 = arith.constant 0 : i32
    return %c0_i32, %c0_i32_0 : i32, i32
  }
  func.func @transform_4(%arg0: i32) -> i32 {
    %c0_i32 = arith.constant 0 : i32
    %c0_i32_0 = arith.constant 0 : i32
    return %c0_i32 : i32
  }
  func.func @transform_5(%arg0: i32) -> (i32, i32) {
    %c0_i32 = arith.constant 0 : i32
    %c0_i32_0 = arith.constant 0 : i32
    return %arg0, %c0_i32 : i32, i32
  }
}

</mosaic_0001>

<bundles_post_ra>
// kernel: tpu_custom_call.1
= control target key start
LH: loop header
LB: loop body
LE: loop exit
PB: predicated region body
PF: predicated region fallthrough
CT: control target
= control target key end

     0   :  { %11 = vsyncpa [#allocation4], 0  ;;  %s279_s0 = inlined_call_operand.hbm [shape: f32[8,32], index: 0, kind: input, shape index: {}]   ;;  %s280_s1 = inlined_call_operand.hbm [shape: f32[32,32], index: 1, kind: input, shape index: {}]   ;;  %s281_s2 = inlined_call_operand.vmem [shape: f32[1,32], index: 2, kind: input, shape index: {}]   ;;  %s282_s3 = inlined_call_operand.vmem [shape: f32[1,32], index: 3, kind: input, shape index: {}]   ;;  %s283_s4 = inlined_call_operand.<no memory space> [shape: f32[1], index: 4, kind: input, shape index: {}]   ;;  %s284_s5 = inlined_call_operand.vmem [shape: f32[8,1], index: 5, kind: output, shape index: {}]  }
   0x1   :  { %12 = vsyncpa [#allocation6], 0  ;;  %s225_s18 = smov [#allocation3]   ;;  %s226_s20 = smov [#allocation5]  }
   0x2   :  { %s19_s19 = sshll.u32 %s225_s18, 4  ;;  %s28_s21 = sshll.u32 %s226_s20, 4  ;;  %s20_s19 = int_to_ptr.vmem [resolvable:$true] %s19_s19  ;;  %s29_s21 = int_to_ptr.vmem [resolvable:$true] %s28_s21 }
   0x3   :  { %s189_s22 = scalar_lea.vmem %s20_s19, 128  ;;  %p194_p1 = scmp.lt.s32.totalorder %s20_s19, %s20_s19 }
   0x4   :  { %p190_p0 = scmp.ne.s32.totalorder %s20_s19, %s189_s22  ;;  %p195_p2 = scmp.lt.s32.totalorder %s189_s22, %s189_s22 }
   0x6   :  { %p196_p3 = por %p195_p2, %p194_p1 }
   0x8   :  { %p197_p4 = pnand %p196_p3, %p190_p0 }
   0xa   :  { %200 = shalt.err (!%p197_p4)
}
   0xb   :  { %22 = dma.hbm_to_vmem [thread:$0]  %s279_s0, 128, %s20_s19, [#allocation4]  }
   0xc   :  { %s209_s25 = scalar_lea.vmem %s29_s21, 512  ;;  %p214_p6 = scmp.lt.s32.totalorder %s29_s21, %s29_s21 }
   0xd   :  { %p210_p5 = scmp.ne.s32.totalorder %s29_s21, %s209_s25  ;;  %p215_p7 = scmp.lt.s32.totalorder %s209_s25, %s209_s25 }
   0xf   :  { %p216_p8 = por %p215_p7, %p214_p6 }
  0x11   :  { %p217_p9 = pnand %p216_p8, %p210_p5 }
  0x13   :  { %220 = shalt.err (!%p217_p9)
}
  0x14   :  { %s227_s26 = smov 128   ;;  %s228_s27 = smov 8  }
  0x15   :  { %34 = dma.hbm_to_vmem [thread:$0]  %s280_s1, 512, %s29_s21, [#allocation6], %s227_s26, %s227_s26, %s228_s27  }
  0x16   :  { %221 = dma.done.wait [#allocation4], 128  }
  0x17   :  { %222 = vsyncadd [#allocation4], 4294967168 }
  0x18   :  { %223 = dma.done.wait [#allocation6], 512  }
  0x19   :  { %224 = vsyncadd [#allocation6], 4294966784  ;;  %v229_v0 = vmov 0.0   ;;  %vm230_vm0 = vmmov 0   ;;  %v51_v1 = vld [vmem:[#allocation5 + $0x18] sm:$0xff]  ;;  %v50_v2 = vld [vmem:[#allocation5 + $0x10] sm:$0xff]  ;;  %v146_v14 = vstv %s283_s4 }
  0x1a   :  { %164 = vmatprep.subr.mxu0 %v229_v0  ;;  %172 = vmatprep.mubr.msk.f32.mxu0 %vm230_vm0, %v229_v0  ;;  %v49_v3 = vld [vmem:[#allocation5 + $0x8] sm:$0xff]  ;;  %v48_v4 = vld [vmem:[#allocation5] sm:$0xff]  ;;  %v47_v5 = vld [vmem:[#allocation3] sm:$0xff]  ;;  %vm59_vm1 = vcmask 261120   ;;  %vm148_vm2 = vcmask 7168  }
  0x1b   :  { %165 = vmatpush3.msra.mxu0 %v51_v1  ;;  %v156_v6 = vld [vmem:[%s281_s2] ss:$0 sm:$0xff] }
  0x1c   :  { %166 = vmatprep.subr.mxu0 %v229_v0  ;;  %v158_v10 = vld [vmem:[%s282_s3] ss:$0 sm:$0xff] }
  0x1d   :  { %167 = vmatpush3.msra.mxu0 %v50_v2 }
  0x1e   :  { %168 = vmatprep.subr.mxu0 %v229_v0 }
  0x1f   :  { %169 = vmatpush3.msra.mxu0 %v49_v3 }
  0x20   :  { %170 = vmatprep.subr.mxu0 %v229_v0 }
  0x21   :  { %171 = vmatpush3.msra.mxu0 %v48_v4 }
  0x22   :  { %173 = vmatmul.mubr.msk.f32.vlgmr.msra.gmra.mxu0 %vm59_vm1, %v47_v5 }
  0xe2   :  { %v129_v7 = vpop.f32.mrf.mxu0 }
  0xe3   :  { %v130_v8 = vadd.f32 %v156_v6, %v129_v7 }
  0xe4   :  { %v174_v9 = vpop.f32.mrf.mxu0 }
  0xe5   :  { %v133_v11 = vmax.f32 %v130_v8, 0.0 }
  0xe7   :  { %v141_v12 = vmul.f32 %v158_v10, %v133_v11 }
  0xe9   :  { %v142_v13 = vsel %vm59_vm1, %v141_v12, 0.0 }
  0xea   :  { %143 = vadd.xlane.f32.xlu0 %v142_v13 }
 0x173   :  { %v144_v15 = vpop.xlane.xlu0 %143 }
 0x174   :  { %v147_v16 = vadd.f32 %v146_v14, %v144_v15 }
 0x176   :  { %149 = vst.msk [vmem:[%s284_s5] sm:$0xff] %vm148_vm2, %v147_v16 }
 0x177   :  { %154 = vsyncpa [#allocation4], 1 }
 0x178   :  { %155 = vsyncpa [#allocation6], 1 }

</bundles_post_ra>
